<compile_context>
chip_gen: v6e
topology: v6e:2x2x1
jax: 0.10.0
libtpu: 0.0.40
codegen_flags: <defaults>
</compile_context>

<pallas_src>
import jax
import jax.numpy as jnp
from jax.experimental import pallas as pl
from jax.experimental.pallas import tpu as pltpu


def _round_up(n, m):
    return ((n + m - 1) // m) * m


def dqn_kernel(x_ref, w1_ref, b1_ref, w2_ref, b2_ref, w3_ref, b3_ref, o_ref):
    x = x_ref[...]
    # Layer 1: Linear(S, 64) + ReLU   (MXU matmul, f32 accumulation)
    h1 = jnp.dot(x, w1_ref[...], preferred_element_type=jnp.float32) + b1_ref[...]
    h1 = jnp.maximum(h1, 0.0)
    if h1.dtype != w2_ref.dtype:          # bf16 weight path: feed MXU in bf16
        h1 = h1.astype(w2_ref.dtype)
    # Layer 2: Linear(64, 32) + ReLU
    h2 = jnp.dot(h1, w2_ref[...], preferred_element_type=jnp.float32) + b2_ref[...]
    h2 = jnp.maximum(h2, 0.0)
    if h2.dtype != w3_ref.dtype:
        h2 = h2.astype(w3_ref.dtype)
    # Layer 3: Linear(32, A_pad)  (no activation; lane-padded output)
    out = jnp.dot(h2, w3_ref[...], preferred_element_type=jnp.float32) + b3_ref[...]
    o_ref[...] = out.astype(o_ref.dtype)


def dqn_forward(x, params, *, block_rows=2048, use_bf16=False):
    """Fused 3-layer DQN MLP.  x: (B, state_size) f32.  params: W1,b1,W2,b2,W3,b3."""
    w1, b1 = params["W1"], params["b1"]
    w2, b2 = params["W2"], params["b2"]
    w3, b3 = params["W3"], params["b3"]

    B, S = x.shape
    H1 = w1.shape[1]   # 64
    H2 = w2.shape[1]   # 32
    A = w3.shape[1]    # action_size

    # --- Lane-dense output: pad the A dim up to a multiple of 128. ---
    A_pad = _round_up(A, 128)
    if A_pad != A:
        w3 = jnp.pad(w3, ((0, 0), (0, A_pad - A)))
        b3 = jnp.pad(b3, ((0, 0), (0, A_pad - A)))

    # --- Batch tiling: TM rows per grid step (multiple of 8). ---
    TM = _round_up(min(block_rows, max(8, _round_up(B, 8))), 8)
    B_pad = _round_up(B, TM)
    if B_pad != B:
        x = jnp.pad(x, ((0, B_pad - B), (0, 0)))   # zero rows; sliced off below

    # --- Optional bf16 input/weight stream (v6e/v7x); biases stay f32. ---
    compute_dtype = jnp.bfloat16 if use_bf16 else x.dtype
    x = x.astype(compute_dtype)
    w1 = w1.astype(compute_dtype)
    w2 = w2.astype(compute_dtype)
    w3 = w3.astype(compute_dtype)

    grid = (B_pad // TM,)
    resident = lambda shape: pl.BlockSpec(shape, lambda i: (0, 0))

    out_padded = pl.pallas_call(
        dqn_kernel,
        out_shape=jax.ShapeDtypeStruct((B_pad, A_pad), jnp.float32),
        grid=grid,
        in_specs=[
            pl.BlockSpec((TM, S), lambda i: (i, 0)),   # x: streamed per batch tile
            resident((S, H1)),                         # W1 (VMEM-resident)
            resident((1, H1)),                         # b1
            resident((H1, H2)),                        # W2
            resident((1, H2)),                         # b2
            resident((H2, A_pad)),                     # W3 (lane-padded)
            resident((1, A_pad)),                      # b3 (lane-padded)
        ],
        out_specs=pl.BlockSpec((TM, A_pad), lambda i: (i, 0)),
        compiler_params=pltpu.CompilerParams(
            dimension_semantics=("parallel",),         # megacore on v7x
        ),
    )(x, w1, b1, w2, b2, w3, b3)

    return out_padded[:B, :A]


def init_params(key, state_size, action_size):
    """Deterministic synthetic init (Kaiming-uniform-ish like PyTorch defaults)."""
    ks = jax.random.split(key, 6)

    def lin(kw, kb, fan_in, fan_out):
        bound = 1.0 / jnp.sqrt(fan_in)
        w = jax.random.uniform(kw, (fan_in, fan_out), jnp.float32, -bound, bound)
        b = jax.random.uniform(kb, (1, fan_out), jnp.float32, -bound, bound)
        return w, b

    w1, b1 = lin(ks[0], ks[1], state_size, 64)
    w2, b2 = lin(ks[2], ks[3], 64, 32)
    w3, b3 = lin(ks[4], ks[5], 32, action_size)
    return {"W1": w1, "b1": b1, "W2": w2, "b2": b2, "W3": w3, "b3": b3}


def reference_forward(x, p):
    h1 = jnp.maximum(x @ p["W1"] + p["b1"], 0.0)
    h2 = jnp.maximum(h1 @ p["W2"] + p["b2"], 0.0)
    return h2 @ p["W3"] + p["b3"]


if __name__ == "__main__":
    key = jax.random.PRNGKey(0)
    k_params, k_x = jax.random.split(key)

    batch, state_size, action_size = 2, 8, 4
    params = init_params(k_params, state_size, action_size)
    x = jax.random.normal(k_x, (batch, state_size), dtype=jnp.float32)

    # f32 path (small batch -> single 8-row tile, grid=(1,))
    out = jax.block_until_ready(dqn_forward(x, params))
    ref = reference_forward(x, params)
    assert out.shape == (batch, action_size)
    assert jnp.allclose(out, ref, atol=1e-5, rtol=1e-5), "f32 mismatch vs reference"

    # bf16 input/weight stream (v6e/v7x option); f32 accumulation -> loose tol.
    out_bf16 = jax.block_until_ready(dqn_forward(x, params, use_bf16=True))
    assert out_bf16.shape == (batch, action_size)
    assert jnp.allclose(out_bf16, ref, atol=1e-1, rtol=1e-1), "bf16 mismatch vs reference"

    # Larger batch exercising the multi-tile grid (4 tiles of 1024 rows).
    big_b = 4096
    xb = jax.random.normal(jax.random.PRNGKey(1), (big_b, state_size), jnp.float32)
    out_big = jax.block_until_ready(dqn_forward(xb, params, block_rows=1024))
    ref_big = reference_forward(xb, params)
    assert out_big.shape == (big_b, action_size)
    assert jnp.allclose(out_big, ref_big, atol=1e-4, rtol=1e-4), "tiled mismatch vs reference"

    print("KERNEL_OK")
</pallas_src>

<mosaic_0001>
module attributes {stable_mosaic.version = 11 : i64} {
  func.func @dqn_kernel(%arg0: i32, %arg1: memref<8x8xf32, #tpu.memory_space<vmem>>, %arg2: memref<8x64xf32, #tpu.memory_space<vmem>>, %arg3: memref<1x64xf32, #tpu.memory_space<vmem>>, %arg4: memref<64x32xf32, #tpu.memory_space<vmem>>, %arg5: memref<1x32xf32, #tpu.memory_space<vmem>>, %arg6: memref<32x128xf32, #tpu.memory_space<vmem>>, %arg7: memref<1x128xf32, #tpu.memory_space<vmem>>, %arg8: memref<8x128xf32, #tpu.memory_space<vmem>>) attributes {dimension_semantics = [#tpu.dimension_semantics<parallel>], iteration_bounds = array<i64: 1>, scalar_prefetch = 0 : i64, scratch_operands = 0 : i64, tpu.core_type = #tpu.core_type<tc>, window_params = [{transform_indices = @transform_0, window_bounds = array<i64: 8, 8>}, {pipeline_mode = #tpu.pipeline_mode<synchronous>, transform_indices = @transform_1, window_bounds = array<i64: 8, 64>}, {pipeline_mode = #tpu.pipeline_mode<synchronous>, transform_indices = @transform_2, window_bounds = array<i64: 1, 64>}, {pipeline_mode = #tpu.pipeline_mode<synchronous>, transform_indices = @transform_3, window_bounds = array<i64: 64, 32>}, {pipeline_mode = #tpu.pipeline_mode<synchronous>, transform_indices = @transform_4, window_bounds = array<i64: 1, 32>}, {pipeline_mode = #tpu.pipeline_mode<synchronous>, transform_indices = @transform_5, window_bounds = array<i64: 32, 128>}, {pipeline_mode = #tpu.pipeline_mode<synchronous>, transform_indices = @transform_6, window_bounds = array<i64: 1, 128>}, {transform_indices = @transform_7, window_bounds = array<i64: 8, 128>}]} {
    %c0 = arith.constant 0 : index
    %c0_0 = arith.constant 0 : index
    %0 = vector.load %arg1[%c0, %c0_0] : memref<8x8xf32, #tpu.memory_space<vmem>>, vector<8x8xf32>
    %c0_1 = arith.constant 0 : index
    %c0_2 = arith.constant 0 : index
    %1 = vector.load %arg2[%c0_1, %c0_2] : memref<8x64xf32, #tpu.memory_space<vmem>>, vector<8x64xf32>
    %cst = arith.constant dense<0.000000e+00> : vector<8x64xf32>
    %2 = tpu.matmul %0, %1, %cst {dimension_numbers = #tpu.dot_dimension_numbers<[1], [0], [0], [1], [0, 0, 1, 1], [], []>} : vector<8x8xf32>, vector<8x64xf32>, vector<8x64xf32> -> vector<8x64xf32>
    %c0_3 = arith.constant 0 : index
    %c0_4 = arith.constant 0 : index
    %3 = vector.load %arg3[%c0_3, %c0_4] : memref<1x64xf32, #tpu.memory_space<vmem>>, vector<1x64xf32>
    %4 = vector.broadcast %3 : vector<1x64xf32> to vector<8x64xf32>
    %5 = arith.addf %2, %4 : vector<8x64xf32>
    %cst_5 = arith.constant 0.000000e+00 : f32
    %6 = vector.broadcast %cst_5 : f32 to vector<8x64xf32>
    %7 = arith.maximumf %5, %6 : vector<8x64xf32>
    %c0_6 = arith.constant 0 : index
    %c0_7 = arith.constant 0 : index
    %8 = vector.load %arg4[%c0_6, %c0_7] : memref<64x32xf32, #tpu.memory_space<vmem>>, vector<64x32xf32>
    %cst_8 = arith.constant dense<0.000000e+00> : vector<8x32xf32>
    %9 = tpu.matmul %7, %8, %cst_8 {dimension_numbers = #tpu.dot_dimension_numbers<[1], [0], [0], [1], [0, 0, 1, 1], [], []>} : vector<8x64xf32>, vector<64x32xf32>, vector<8x32xf32> -> vector<8x32xf32>
    %c0_9 = arith.constant 0 : index
    %c0_10 = arith.constant 0 : index
    %10 = vector.load %arg5[%c0_9, %c0_10] : memref<1x32xf32, #tpu.memory_space<vmem>>, vector<1x32xf32>
    %11 = vector.broadcast %10 : vector<1x32xf32> to vector<8x32xf32>
    %12 = arith.addf %9, %11 : vector<8x32xf32>
    %cst_11 = arith.constant 0.000000e+00 : f32
    %13 = vector.broadcast %cst_11 : f32 to vector<8x32xf32>
    %14 = arith.maximumf %12, %13 : vector<8x32xf32>
    %c0_12 = arith.constant 0 : index
    %c0_13 = arith.constant 0 : index
    %15 = vector.load %arg6[%c0_12, %c0_13] : memref<32x128xf32, #tpu.memory_space<vmem>>, vector<32x128xf32>
    %cst_14 = arith.constant dense<0.000000e+00> : vector<8x128xf32>
    %16 = tpu.matmul %14, %15, %cst_14 {dimension_numbers = #tpu.dot_dimension_numbers<[1], [0], [0], [1], [0, 0, 1, 1], [], []>} : vector<8x32xf32>, vector<32x128xf32>, vector<8x128xf32> -> vector<8x128xf32>
    %c0_15 = arith.constant 0 : index
    %c0_16 = arith.constant 0 : index
    %17 = vector.load %arg7[%c0_15, %c0_16] : memref<1x128xf32, #tpu.memory_space<vmem>>, vector<1x128xf32>
    %18 = vector.broadcast %17 : vector<1x128xf32> to vector<8x128xf32>
    %19 = arith.addf %16, %18 : vector<8x128xf32>
    %c0_17 = arith.constant 0 : index
    %c0_18 = arith.constant 0 : index
    %20 = vector.load %arg8[%c0_17, %c0_18] : memref<8x128xf32, #tpu.memory_space<vmem>>, vector<8x128xf32>
    tpu.vector_store %arg8[%c0_17, %c0_18], %19 {strides = array<i32>} : memref<8x128xf32, #tpu.memory_space<vmem>>, vector<8x128xf32>,
    return
  }
  func.func @transform_0(%arg0: i32) -> (i32, i32) {
    %c0_i32 = arith.constant 0 : i32
    %c0_i32_0 = arith.constant 0 : i32
    return %arg0, %c0_i32 : i32, i32
  }
  func.func @transform_1(%arg0: i32) -> (i32, i32) {
    %c0_i32 = arith.constant 0 : i32
    %c0_i32_0 = arith.constant 0 : i32
    %c0_i32_1 = arith.constant 0 : i32
    return %c0_i32, %c0_i32_0 : i32, i32
  }
  func.func @transform_2(%arg0: i32) -> (i32, i32) {
    %c0_i32 = arith.constant 0 : i32
    %c0_i32_0 = arith.constant 0 : i32
    %c0_i32_1 = arith.constant 0 : i32
    return %c0_i32, %c0_i32_0 : i32, i32
  }
  func.func @transform_3(%arg0: i32) -> (i32, i32) {
    %c0_i32 = arith.constant 0 : i32
    %c0_i32_0 = arith.constant 0 : i32
    %c0_i32_1 = arith.constant 0 : i32
    return %c0_i32, %c0_i32_0 : i32, i32
  }
  func.func @transform_4(%arg0: i32) -> (i32, i32) {
    %c0_i32 = arith.constant 0 : i32
    %c0_i32_0 = arith.constant 0 : i32
    %c0_i32_1 = arith.constant 0 : i32
    return %c0_i32, %c0_i32_0 : i32, i32
  }
  func.func @transform_5(%arg0: i32) -> (i32, i32) {
    %c0_i32 = arith.constant 0 : i32
    %c0_i32_0 = arith.constant 0 : i32
    %c0_i32_1 = arith.constant 0 : i32
    return %c0_i32, %c0_i32_0 : i32, i32
  }
  func.func @transform_6(%arg0: i32) -> (i32, i32) {
    %c0_i32 = arith.constant 0 : i32
    %c0_i32_0 = arith.constant 0 : i32
    %c0_i32_1 = arith.constant 0 : i32
    return %c0_i32, %c0_i32_0 : i32, i32
  }
  func.func @transform_7(%arg0: i32) -> (i32, i32) {
    %c0_i32 = arith.constant 0 : i32
    %c0_i32_0 = arith.constant 0 : i32
    return %arg0, %c0_i32 : i32, i32
  }
}

</mosaic_0001>

<bundles_post_ra>
// kernel: tpu_custom_call.1
= control target key start
LH: loop header
LB: loop body
LE: loop exit
PB: predicated region body
PF: predicated region fallthrough
CT: control target
= control target key end

     0   :  { %vm36_vm0 = vcmask 64512   ;;  %v383_v3 = vmov 0.0   ;;  %vm384_vm1 = vmmov 0   ;;  %s480_s0 = inlined_call_operand.vmem [shape: f32[8,8], index: 0, kind: input, shape index: {}]   ;;  %s481_s1 = inlined_call_operand.vmem [shape: f32[8,64], index: 1, kind: input, shape index: {}]   ;;  %s482_s2 = inlined_call_operand.vmem [shape: f32[1,64], index: 2, kind: input, shape index: {}]   ;;  %s483_s3 = inlined_call_operand.vmem [shape: f32[64,32], index: 3, kind: input, shape index: {}]   ;;  %s484_s4 = inlined_call_operand.vmem [shape: f32[1,32], index: 4, kind: input, shape index: {}]   ;;  %s485_s5 = inlined_call_operand.vmem [shape: f32[32,128], index: 5, kind: input, shape index: {}]   ;;  %s486_s6 = inlined_call_operand.vmem [shape: f32[1,128], index: 6, kind: input, shape index: {}]   ;;  %s487_s7 = inlined_call_operand.hbm [shape: f32[8,128], index: 7, kind: output, shape index: {}]  }
   0x1   :  { %v28_v0 = vld [vmem:[%s481_s1] sm:$0xff]  ;;  %v118_v2 = vld [vmem:[%s483_s3 + $0x38] sm:$0xff]  ;;  %323 = vmatprep.subr.mxu0 %v383_v3  ;;  %325 = vmatprep.mubr.msk.f32.mxu0 %vm384_vm1, %v383_v3  ;;  %v117_v4 = vld [vmem:[%s483_s3 + $0x30] sm:$0xff] }
   0x2   :  { %v27_v1 = vld [vmem:[%s480_s0] sm:$0xff]  ;;  %324 = vmatpush3.msra.mxu0 %v28_v0  ;;  %328 = vmatprep.subr.mxu1 %v383_v3 }
   0x3   :  { %12 = vsyncpa [#allocation3], 0  ;;  %326 = vmatmul.mubr.msk.f32.vlgmr.msra.gmra.mxu0 %vm36_vm0, %v27_v1  ;;  %329 = vmatpush3.msra.mxu1 %v118_v2  ;;  %v116_v5 = vld [vmem:[%s483_s3 + $0x28] sm:$0xff]  ;;  %v115_v6 = vld [vmem:[%s483_s3 + $0x20] sm:$0xff]  ;;  %vm126_vm2 = vcmask 523264   ;;  %vm212_vm3 = vcmask 261120  }
   0x4   :  { %330 = vmatprep.subr.mxu1 %v383_v3  ;;  %344 = vmatprep.mubr.msk.f32.mxu1 %vm384_vm1, %v383_v3  ;;  %v114_v7 = vld [vmem:[%s483_s3 + $0x18] sm:$0xff]  ;;  %v113_v8 = vld [vmem:[%s483_s3 + $0x10] sm:$0xff]  ;;  %v112_v9 = vld [vmem:[%s483_s3 + $0x8] sm:$0xff]  ;;  %s385_s8 = smov [#allocation2]  }
   0x5   :  { %331 = vmatpush3.msra.mxu1 %v117_v4  ;;  %347 = vmatprep.subr.mxu0 %v383_v3  ;;  %v111_v10 = vld [vmem:[%s483_s3] sm:$0xff]  ;;  %v204_v11 = vld [vmem:[%s485_s5 + $0x18] sm:$0xff]  ;;  %v203_v17 = vld [vmem:[%s485_s5 + $0x10] sm:$0xff]  ;;  %s293_s0 = sshll.u32 %s385_s8, 4  ;;  %s294_s0 = int_to_ptr.vmem [resolvable:$true] %s293_s0 }
   0x6   :  { %332 = vmatprep.subr.mxu1 %v383_v3  ;;  %355 = vmatprep.mubr.msk.f32.mxu0 %vm384_vm1, %v383_v3  ;;  %v301_v12 = vld [vmem:[%s482_s2] ss:$0 sm:$0xff]  ;;  %v202_v18 = vld [vmem:[%s485_s5 + $0x8] sm:$0xff]  ;;  %p366_p1 = scmp.lt.s32.totalorder %s294_s0, %s294_s0 }
   0x7   :  { %333 = vmatpush3.msra.mxu1 %v116_v5  ;;  %348 = vmatpush3.msra.mxu0 %v204_v11  ;;  %v201_v19 = vld [vmem:[%s485_s5] sm:$0xff]  ;;  %s361_s5 = scalar_lea.vmem %s294_s0, 128 }
   0x8   :  { %334 = vmatprep.subr.mxu1 %v383_v3  ;;  %349 = vmatprep.subr.mxu0 %v383_v3  ;;  %v303_v20 = vld [vmem:[%s484_s4] ss:$0 sm:$0xff]  ;;  %p362_p0 = scmp.ne.s32.totalorder %s294_s0, %s361_s5  ;;  %p367_p2 = scmp.lt.s32.totalorder %s361_s5, %s361_s5 }
   0x9   :  { %335 = vmatpush3.msra.mxu1 %v115_v6  ;;  %350 = vmatpush3.msra.mxu0 %v203_v17  ;;  %v305_v25 = vld [vmem:[%s486_s6] ss:$0 sm:$0xff] }
   0xa   :  { %336 = vmatprep.subr.mxu1 %v383_v3  ;;  %351 = vmatprep.subr.mxu0 %v383_v3  ;;  %p368_p3 = por %p367_p2, %p366_p1 }
   0xb   :  { %337 = vmatpush3.msra.mxu1 %v114_v7  ;;  %352 = vmatpush3.msra.mxu0 %v202_v18 }
   0xc   :  { %338 = vmatprep.subr.mxu1 %v383_v3  ;;  %353 = vmatprep.subr.mxu0 %v383_v3  ;;  %p369_p4 = pnand %p368_p3, %p362_p0 }
   0xd   :  { %339 = vmatpush3.msra.mxu1 %v113_v8  ;;  %354 = vmatpush3.msra.mxu0 %v201_v19 }
   0xe   :  { %340 = vmatprep.subr.mxu1 %v383_v3 }
   0xf   :  { %341 = vmatpush3.msra.mxu1 %v112_v9 }
  0x10   :  { %342 = vmatprep.subr.mxu1 %v383_v3 }
  0x11   :  { %343 = vmatpush3.msra.mxu1 %v111_v10 }
  0xc3   :  { %v106_v13 = vpop.f32.mrf.mxu0 }
  0xc4   :  { %v107_v14 = vadd.f32 %v301_v12, %v106_v13 }
  0xc5   :  { %v327_v15 = vpop.f32.mrf.mxu0 }
  0xc6   :  { %v110_v16 = vmax.f32 %v107_v14, 0.0 }
  0xc8   :  { %345 = vmatmul.mubr.msk.f32.vlgmr.msra.gmra.mxu1 %vm126_vm2, %v110_v16 }
 0x188   :  { %v196_v21 = vpop.f32.mrf.mxu1 }
 0x189   :  { %v197_v22 = vadd.f32 %v303_v20, %v196_v21 }
 0x18a   :  { %v346_v23 = vpop.f32.mrf.mxu1 }
 0x18b   :  { %v200_v24 = vmax.f32 %v197_v22, 0.0 }
 0x18d   :  { %356 = vmatmul.mubr.msk.f32.vlgmr.msra.gmra.mxu0 %vm212_vm3, %v200_v24 }
 0x24d   :  { %v282_v26 = vpop.f32.mrf.mxu0 }
 0x24e   :  { %v283_v27 = vadd.f32 %v305_v25, %v282_v26 }
 0x24f   :  { %v357_v28 = vpop.f32.mrf.mxu0 }
 0x250   :  { %286 = vst [vmem:[#allocation2] sm:$0xff] %v283_v27 }
 0x251   :  { %372 = shalt.err (!%p369_p4)
}
 0x252   :  { %296 = dma.vmem_to_hbm [thread:$0]  %s294_s0, 128, %s487_s7, [#allocation3]  }
 0x253   :  { %381 = dma.done.wait [#allocation3], 128  }
 0x254   :  { %382 = vsyncadd [#allocation3], 4294967168 }
 0x255   :  { %300 = vsyncpa [#allocation3], 1 }

</bundles_post_ra>
